<compile_context>
chip_gen: v7x
topology: tpu7x:2x2x1
jax: 0.10.0
libtpu: 0.0.40
codegen_flags: <defaults>
</compile_context>

<pallas_src>
import jax
import jax.numpy as jnp
from jax.experimental import pallas as pl
from jax.experimental.pallas import tpu as pltpu

EPS = 1e-12  # epsilon used when normalizing magnitudes (matches the reference)


def _tangent_perceptron_kernel(xr_ref, xi_ref, w_ref, b_ref, or_ref, oi_ref):
    # Two dots with an identical RHS: Mosaic keeps the RHS staged in the MXU,
    # and we avoid the VMEM copies that concatenate + slicing would create.
    yr = jnp.dot(xr_ref[...], w_ref[...], preferred_element_type=jnp.float32)
    yi = jnp.dot(xi_ref[...], w_ref[...], preferred_element_type=jnp.float32)

    # Magnitude nonlinearity, all in f32.  Single fused rsqrt (one EUP op):
    #   inv ~= 1 / (|z| + eps),   mag = mag2 * inv ~= |z|
    mag2 = yr * yr + yi * yi
    inv = jax.lax.rsqrt(mag2 + EPS * EPS)
    mag = mag2 * inv
    rescale = jnp.maximum(mag + b_ref[...], 0.0) * inv

    or_ref[...] = (rescale * yr).astype(or_ref.dtype)
    oi_ref[...] = (rescale * yi).astype(oi_ref.dtype)


def _round_up(x, m):
    return ((x + m - 1) // m) * m


def _vmem_limit_bytes():
    """Generation-aware scoped-VMEM limit: ~70% of physical VMEM, capped at 96 MiB.

    v5e/v6e (128 MiB)  -> ~90 MiB;  v7x (64 MiB) -> ~45 MiB.  Falls back to a
    conservative 44 MiB when the hardware query is unavailable (e.g. interpret).
    """
    try:
        cap = int(pltpu.get_tpu_info().vmem_capacity_bytes)
    except Exception:  # noqa: BLE001 - interpret mode / non-TPU tracing
        cap = None
    if not cap:
        return 44 * 1024 * 1024
    return min(96 * 1024 * 1024, int(cap * 0.7))


def _pick_tile_n(n, c_in, c_pad, in_bytes, out_bytes, vmem_limit):
    """Row tile from a per-chip VMEM byte budget (inputs + outputs double-buffered
    + in-kernel f32 temporaries), rounded to a multiple of 16 (bf16 sublane pack)."""
    per_row = (2 * c_in * in_bytes * 2        # xr, xi blocks, double-buffered
               + 2 * c_pad * out_bytes * 2    # out_r, out_i blocks, double-buffered
               + 6 * c_pad * 4)               # yr, yi, mag2, inv, mag, rescale (f32)
    weight_bytes = c_in * c_pad * in_bytes * 2 + c_pad * 4 * 2  # resident W, b
    budget = max(int(vmem_limit * 0.6) - weight_bytes, 16 * per_row)
    tile = max(16, (budget // per_row) // 16 * 16)
    tile = min(tile, 2048)
    # Keep >= 2 grid steps when there is enough work: enables pipelining and
    # lets the "parallel" axis shard across v7x's two TensorCores.
    if n > 16:
        tile = min(tile, max(16, _round_up(-(-n // 2), 16)))
    return min(tile, _round_up(n, 16))


def prepare_params(weight, bias, *, param_dtype=jnp.float32):
    """One-time parameter prep: transpose W and pad C_out up to a multiple of 128
    (lane-dense outputs -> unmasked vst).  Padded W columns AND padded bias entries
    are zero, which guarantees the padded output columns are exactly 0."""
    c_out, c_in = weight.shape
    c_pad = max(128, _round_up(c_out, 128))
    w_p = jnp.zeros((c_in, c_pad), param_dtype).at[:, :c_out].set(
        weight.T.astype(param_dtype))
    b_p = jnp.zeros((1, c_pad), jnp.float32).at[:, :c_out].set(
        bias.astype(jnp.float32))
    return w_p, b_p


def tangent_perceptron_split(xr, xi, w_p, b_p, *, tile_n=None, out_dtype=None):
    """Core kernel on split real/imag layout.

    xr, xi: [N, C_in];  w_p: [C_in, Cp];  b_p: [1, Cp] f32  (Cp = padded C_out).
    Returns (out_r, out_i), shape [N, Cp], dtype `out_dtype` (default: xr.dtype).
    Keep this split layout across stacked layers to avoid HBM repacking passes.
    """
    n, c_in = xr.shape
    c_pad = w_p.shape[1]
    out_dtype = xr.dtype if out_dtype is None else out_dtype
    in_bytes = jnp.dtype(xr.dtype).itemsize
    out_bytes = jnp.dtype(out_dtype).itemsize

    vmem_limit = _vmem_limit_bytes()
    if tile_n is None:
        tile_n = _pick_tile_n(n, c_in, c_pad, in_bytes, out_bytes, vmem_limit)

    # No divisibility requirement: pad rows up to the tile and slice afterwards.
    n_pad = _round_up(n, tile_n)
    if n_pad != n:
        xr = jnp.pad(xr, ((0, n_pad - n), (0, 0)))
        xi = jnp.pad(xi, ((0, n_pad - n), (0, 0)))

    x_spec = pl.BlockSpec((tile_n, c_in), lambda i: (i, 0))
    w_spec = pl.BlockSpec((c_in, c_pad), lambda i: (0, 0))
    b_spec = pl.BlockSpec((1, c_pad), lambda i: (0, 0))
    o_spec = pl.BlockSpec((tile_n, c_pad), lambda i: (i, 0))

    cost = pl.CostEstimate(
        flops=2 * 2 * n_pad * c_in * c_pad,              # two MXU dots
        transcendentals=n_pad * c_pad,                   # one rsqrt per element
        bytes_accessed=(2 * n_pad * c_in * in_bytes
                        + c_in * c_pad * jnp.dtype(w_p.dtype).itemsize
                        + c_pad * 4
                        + 2 * n_pad * c_pad * out_bytes),
    )

    out_r, out_i = pl.pallas_call(
        _tangent_perceptron_kernel,
        out_shape=(
            jax.ShapeDtypeStruct((n_pad, c_pad), out_dtype),
            jax.ShapeDtypeStruct((n_pad, c_pad), out_dtype),
        ),
        grid=(n_pad // tile_n,),
        in_specs=[x_spec, x_spec, w_spec, b_spec],
        out_specs=(o_spec, o_spec),
        compiler_params=pltpu.CompilerParams(
            dimension_semantics=("parallel",),
            vmem_limit_bytes=vmem_limit,
        ),
        cost_estimate=cost,
    )(xr, xi, w_p, b_p)

    if n_pad != n:
        out_r = out_r[:n]
        out_i = out_i[:n]
    return out_r, out_i


def tangent_perceptron(x, weight, bias, *, compute_dtype=jnp.float32, tile_n=None):
    """Packed-layout convenience wrapper matching the PyTorch interface.

    x: [N, C_in, 2], weight: [C_out, C_in], bias: [C_out] -> [N, C_out, 2].
    compute_dtype=jnp.bfloat16 is available when bandwidth matters more than the
    last ~2 decimal digits; the default f32 path matches the reference closely.
    """
    n, c_in, two = x.shape
    assert two == 2
    c_out = weight.shape[0]

    w_p, b_p = prepare_params(weight, bias, param_dtype=compute_dtype)
    # De-interleave once at the model boundary; stacked layers should keep the
    # split (xr, xi) layout and call tangent_perceptron_split directly.
    xr = x[..., 0].astype(compute_dtype)
    xi = x[..., 1].astype(compute_dtype)

    out_r, out_i = tangent_perceptron_split(
        xr, xi, w_p, b_p, tile_n=tile_n, out_dtype=jnp.float32)
    return jnp.stack([out_r[:, :c_out], out_i[:, :c_out]], axis=-1).astype(x.dtype)


def _reference(x, weight, bias):
    # Pure-JAX f32 reference with the PyTorch module's semantics.
    y = jnp.einsum("oc,nck->nok", weight, x)            # shared-weight linear
    mag = jnp.linalg.norm(y, axis=-1, keepdims=True)    # |z| per channel
    rescale = jax.nn.relu(mag + bias[None, :, None]) / (mag + EPS)
    return rescale * y


if __name__ == "__main__":
    N, C_IN, C_OUT = 64, 16, 32

    key = jax.random.PRNGKey(0)
    k_x, k_w, k_b = jax.random.split(key, 3)

    x = jax.random.normal(k_x, (N, C_IN, 2), dtype=jnp.float32)

    # torch.nn.Linear-style uniform init for W; non-zero bias so both branches
    # of the magnitude ReLU are exercised.
    bound = 1.0 / jnp.sqrt(jnp.float32(C_IN))
    weight = jax.random.uniform(k_w, (C_OUT, C_IN), jnp.float32, -bound, bound)
    bias = jax.random.uniform(k_b, (C_OUT,), jnp.float32, -0.5, 0.5)

    out = jax.block_until_ready(tangent_perceptron(x, weight, bias))
    ref = _reference(x, weight, bias)

    assert out.shape == (N, C_OUT, 2)
    max_err = float(jnp.max(jnp.abs(out - ref)))
    # f32 matmul + fused rsqrt epsilon placement -> tiny deviation only.
    assert jnp.allclose(out, ref, atol=1e-2, rtol=1e-2), max_err

    print("KERNEL_OK")
</pallas_src>

<mosaic_0001>
module attributes {stable_mosaic.version = 11 : i64} {
  func.func @_tangent_perceptron_kernel(%arg0: i32, %arg1: memref<32x16xf32, #tpu.memory_space<vmem>>, %arg2: memref<32x16xf32, #tpu.memory_space<vmem>>, %arg3: memref<16x128xf32, #tpu.memory_space<vmem>>, %arg4: memref<1x128xf32, #tpu.memory_space<vmem>>, %arg5: memref<32x128xf32, #tpu.memory_space<vmem>>, %arg6: memref<32x128xf32, #tpu.memory_space<vmem>>) attributes {dimension_semantics = [#tpu.dimension_semantics<parallel>], iteration_bounds = array<i64: 2>, scalar_prefetch = 0 : i64, scratch_operands = 0 : i64, tpu.core_type = #tpu.core_type<tc>, window_params = [{transform_indices = @transform_0, window_bounds = array<i64: 32, 16>}, {transform_indices = @transform_1, window_bounds = array<i64: 32, 16>}, {pipeline_mode = #tpu.pipeline_mode<synchronous>, transform_indices = @transform_2, window_bounds = array<i64: 16, 128>}, {pipeline_mode = #tpu.pipeline_mode<synchronous>, transform_indices = @transform_3, window_bounds = array<i64: 1, 128>}, {transform_indices = @transform_4, window_bounds = array<i64: 32, 128>}, {transform_indices = @transform_5, window_bounds = array<i64: 32, 128>}]} {
    %c0 = arith.constant 0 : index
    %c0_0 = arith.constant 0 : index
    %0 = vector.load %arg1[%c0, %c0_0] : memref<32x16xf32, #tpu.memory_space<vmem>>, vector<32x16xf32>
    %c0_1 = arith.constant 0 : index
    %c0_2 = arith.constant 0 : index
    %1 = vector.load %arg3[%c0_1, %c0_2] : memref<16x128xf32, #tpu.memory_space<vmem>>, vector<16x128xf32>
    %cst = arith.constant dense<0.000000e+00> : vector<32x128xf32>
    %2 = tpu.matmul %0, %1, %cst {dimension_numbers = #tpu.dot_dimension_numbers<[1], [0], [0], [1], [0, 0, 1, 1], [], []>} : vector<32x16xf32>, vector<16x128xf32>, vector<32x128xf32> -> vector<32x128xf32>
    %c0_3 = arith.constant 0 : index
    %c0_4 = arith.constant 0 : index
    %3 = vector.load %arg2[%c0_3, %c0_4] : memref<32x16xf32, #tpu.memory_space<vmem>>, vector<32x16xf32>
    %c0_5 = arith.constant 0 : index
    %c0_6 = arith.constant 0 : index
    %4 = vector.load %arg3[%c0_5, %c0_6] : memref<16x128xf32, #tpu.memory_space<vmem>>, vector<16x128xf32>
    %cst_7 = arith.constant dense<0.000000e+00> : vector<32x128xf32>
    %5 = tpu.matmul %3, %4, %cst_7 {dimension_numbers = #tpu.dot_dimension_numbers<[1], [0], [0], [1], [0, 0, 1, 1], [], []>} : vector<32x16xf32>, vector<16x128xf32>, vector<32x128xf32> -> vector<32x128xf32>
    %6 = arith.mulf %2, %2 : vector<32x128xf32>
    %7 = arith.mulf %5, %5 : vector<32x128xf32>
    %8 = arith.addf %6, %7 : vector<32x128xf32>
    %cst_8 = arith.constant 1.000000e-24 : f32
    %9 = vector.broadcast %cst_8 : f32 to vector<32x128xf32>
    %10 = arith.addf %8, %9 : vector<32x128xf32>
    %11 = math.rsqrt %10 : vector<32x128xf32>
    %12 = arith.mulf %8, %11 : vector<32x128xf32>
    %c0_9 = arith.constant 0 : index
    %c0_10 = arith.constant 0 : index
    %13 = vector.load %arg4[%c0_9, %c0_10] : memref<1x128xf32, #tpu.memory_space<vmem>>, vector<1x128xf32>
    %14 = vector.broadcast %13 : vector<1x128xf32> to vector<32x128xf32>
    %15 = arith.addf %12, %14 : vector<32x128xf32>
    %cst_11 = arith.constant 0.000000e+00 : f32
    %16 = vector.broadcast %cst_11 : f32 to vector<32x128xf32>
    %17 = arith.maximumf %15, %16 : vector<32x128xf32>
    %18 = arith.mulf %17, %11 : vector<32x128xf32>
    %19 = arith.mulf %18, %2 : vector<32x128xf32>
    %c0_12 = arith.constant 0 : index
    %c0_13 = arith.constant 0 : index
    %20 = vector.load %arg5[%c0_12, %c0_13] : memref<32x128xf32, #tpu.memory_space<vmem>>, vector<32x128xf32>
    tpu.vector_store %arg5[%c0_12, %c0_13], %19 {strides = array<i32>} : memref<32x128xf32, #tpu.memory_space<vmem>>, vector<32x128xf32>,
    %21 = arith.mulf %18, %5 : vector<32x128xf32>
    %c0_14 = arith.constant 0 : index
    %c0_15 = arith.constant 0 : index
    %22 = vector.load %arg6[%c0_14, %c0_15] : memref<32x128xf32, #tpu.memory_space<vmem>>, vector<32x128xf32>
    tpu.vector_store %arg6[%c0_14, %c0_15], %21 {strides = array<i32>} : memref<32x128xf32, #tpu.memory_space<vmem>>, vector<32x128xf32>,
    return
  }
  func.func @transform_0(%arg0: i32) -> (i32, i32) {
    %c0_i32 = arith.constant 0 : i32
    %c0_i32_0 = arith.constant 0 : i32
    return %arg0, %c0_i32 : i32, i32
  }
  func.func @transform_1(%arg0: i32) -> (i32, i32) {
    %c0_i32 = arith.constant 0 : i32
    %c0_i32_0 = arith.constant 0 : i32
    return %arg0, %c0_i32 : i32, i32
  }
  func.func @transform_2(%arg0: i32) -> (i32, i32) {
    %c0_i32 = arith.constant 0 : i32
    %c0_i32_0 = arith.constant 0 : i32
    %c0_i32_1 = arith.constant 0 : i32
    return %c0_i32, %c0_i32_0 : i32, i32
  }
  func.func @transform_3(%arg0: i32) -> (i32, i32) {
    %c0_i32 = arith.constant 0 : i32
    %c0_i32_0 = arith.constant 0 : i32
    %c0_i32_1 = arith.constant 0 : i32
    return %c0_i32, %c0_i32_0 : i32, i32
  }
  func.func @transform_4(%arg0: i32) -> (i32, i32) {
    %c0_i32 = arith.constant 0 : i32
    %c0_i32_0 = arith.constant 0 : i32
    return %arg0, %c0_i32 : i32, i32
  }
  func.func @transform_5(%arg0: i32) -> (i32, i32) {
    %c0_i32 = arith.constant 0 : i32
    %c0_i32_0 = arith.constant 0 : i32
    return %arg0, %c0_i32 : i32, i32
  }
}

</mosaic_0001>

<bundles_post_ra>
// kernel: tpu_custom_call.1
= control target key start
LH: loop header
LB: loop body
LE: loop exit
PB: predicated region body
PF: predicated region fallthrough
CT: control target
= control target key end

     0   :  { %11 = vsyncpa [#allocation3], 0  ;;  %s1080_s0 = inlined_call_operand.vmem [shape: f32[64,16], index: 0, kind: input, shape index: {}]   ;;  %s1081_s1 = inlined_call_operand.vmem [shape: f32[64,16], index: 1, kind: input, shape index: {}]   ;;  %s1082_s2 = inlined_call_operand.vmem [shape: f32[16,128], index: 2, kind: input, shape index: {}]   ;;  %s1083_s3 = inlined_call_operand.vmem [shape: f32[1,128], index: 3, kind: input, shape index: {}]   ;;  %s1084_s4 = inlined_call_operand.hbm [shape: f32[64,128], index: 4, kind: output, shape index: {0}]   ;;  %s1085_s5 = inlined_call_operand.hbm [shape: f32[64,128], index: 5, kind: output, shape index: {1}]  }
   0x1   :  { %13 = vsyncpa [#allocation3 + $0x1], 0 }
   0x2   :  { %14 = vsyncpa [#allocation5], 0 }
   0x3   :  { %16 = vsyncpa [#allocation5 + $0x1], 0  ;;  %s918_s18 = smov 0   ;;  %s920_s19 = smov 0  }
   0x4   :  { %s922_s20 = smov 0   ;;  %s924_s21 = smov 0  }
   0x5 LB: > { %s939_s22 = sadd.s32 4294967295, %s882_s21   ;;  %s665_s23 = sadd.s32 4294967294, %s882_s21   ;;  %s882_s21 = sphi %s924_s21, %s1091_s21   ;;  %s878_s20 = sphi %s922_s20, %s1090_s20   ;;  %s874_s19 = sphi %s920_s19, %s1089_s19   ;;  %s870_s18 = sphi %s918_s18, %s1088_s18  }
   0x6   : > { %s943_s24 = sadd.s32 1, %s882_s21   ;;  %s123_s25 = sadd.s32 1, %s878_s20 }
   0x7   : > { %s120_s26 = ssub.s32 %s882_s21, %s943_s24  ;;  %p133_p0 = scmp.ne.s32.totalorder %s878_s20, %s874_s19 }
   0x8   : > { %p121_p1 = scmp.eq.s32.totalorder %s120_s26, 0  ;;  %p134_p2 = scmp.eq.s32.totalorder %s939_s22, 1 }
   0x9   : > { %p139_p3 = scmp.ne.s32.totalorder %s874_s19, %s870_s18  ;;  %p140_p4 = scmp.eq.s32.totalorder %s665_s23, 1 }
   0xa   : > { %s954_s27 = scalar_select %p121_p1, %s878_s20, %s123_s25  }
   0xb   : > { %p956_p5 = por %p134_p2, %p133_p0  ;;  %p960_p6 = por %p140_p4, %p139_p3 }
   0xc   : > { %p668_p7 = scmp.ge.s32.totalorder %s882_s21, 1  ;;  %p208_p8 = scmp.lt.s32.totalorder %s882_s21, 3 }
   0xe   : > { %p209_p9 = pnand %p668_p7, %p208_p8 }
   0xf   : > { %v264_v0 = vld [vmem:[%s1082_s2] sm:$0xff] (!%p209_p9)  ;;  %v265_v1 = vld [vmem:[%s1082_s2 + $0x8] sm:$0xff] (!%p209_p9)  ;;  %s671_s9 = sshll.u32 (!%p209_p9), %s939_s22, 2  ;;  %vm266_vm0 = vcmask (!%p209_p9), 130048   ;;  %s991_s25 = sand.u32 (!%p209_p9), 1, %s874_s19  }
  0x10   : > { %212 = sbr.rel (%p209_p9) target bundleno = 311 (0x137), region = 36  ;;  %v726_v2 = vpack.c.bf16 (!%p209_p9), %v265_v1, %v264_v0  ;;  %p247_p10 = scmp.lt.s32.totalorder (!%p209_p9), %s671_s9, 7  ;;  %v683_v36 = vld [vmem:[%s1083_s3] ss:$0 sm:$0xff] (!%p209_p9) }
  0x11   : > { %s669_s26 = sshll.u32 (!%p209_p9), %s991_s25, 5  ;;  %s692_s7 = sshll.u32 (!%p209_p9), %s939_s22, 9 }
  0x12   : > { %727 = vmatprep.subr.bf16.mxu0 (!%p209_p9), %v726_v2  ;;  %731 = vmatprep.subr.bf16.mxu1 (!%p209_p9), %v726_v2  ;;  %s238_s30 = scalar_lea.vmem (!%p209_p9), [#allocation2], %s669_s26  ;;  %s245_s8 = scalar_lea.vmem (!%p209_p9), [#allocation4], %s669_s26 }
  0x13   : > { %729 = vmatpush3.bf16.msra.mxu0 (!%p209_p9), %v726_v2  ;;  %733 = vmatpush3.bf16.msra.mxu1 (!%p209_p9), %v726_v2  ;;  %s543_s6 = sshll.u32 (!%p209_p9), %s238_s30, 4  ;;  %s1000_s22 = scalar_lea.hbm (!%p209_p9), %s1084_s4, %s692_s7  ;;  %s995_s6 = int_to_ptr.vmem [resolvable:$true] %s543_s6 }
  0x14   : > { %s1007_s14 = scalar_lea.hbm (!%p209_p9), %s1085_s5, %s692_s7  ;;  %s525_s15 = scalar_lea.sflag (!%p209_p9), [#allocation3], %s991_s25 }
  0x15   : > { %s884_s17 = smov (!%p209_p9), [#allocation2]  }
  0x16   : > { %s792_s23 = sshll.u32 (!%p209_p9), %s884_s17, 4  ;;  %s793_s23 = int_to_ptr.vmem [resolvable:$false] %s792_s23 }
  0x17   : > { %s1093_s9 = smov (!%p247_p10, %s671_s9), 7  ;;  %s794_s26 = scalar_lea.vmem %s793_s23, 1024 }
  0x18   : > { %s672_s10 = sshll.u32 %s1093_s9, 3  ;;  %s559_s9 = sshll.u32 %s245_s8, 4  ;;  %s1002_s9 = int_to_ptr.vmem [resolvable:$true] %s559_s9 }
  0x19   : > { %s250_s13 = scalar_lea.vmem %s1080_s0, %s672_s10  ;;  %s256_s16 = scalar_lea.vmem %s1081_s1, %s672_s10 }
  0x1a   : > { %v260_v3 = vld [vmem:[%s250_s13] sm:$0xff]  ;;  %v261_v5 = vld [vmem:[%s250_s13 + $0x8] sm:$0xff]  ;;  %v262_v7 = vld [vmem:[%s250_s13 + $0x10] sm:$0xff]  ;;  %p795_p0 = scmp.lt.s32.totalorder %s995_s6, %s793_s23 }
  0x1b   : > { %v364_v4 = vld [vmem:[%s256_s16] sm:$0xff]  ;;  %710 = vmatprep.mubr.msk.f32.mxu0 %vm266_vm0, %v260_v3  ;;  %v365_v6 = vld [vmem:[%s256_s16 + $0x8] sm:$0xff]  ;;  %v366_v8 = vld [vmem:[%s256_s16 + $0x10] sm:$0xff] }
  0x1c   : > { %720 = vmatprep.mubr.msk.f32.mxu1 %vm266_vm0, %v364_v4  ;;  %711 = vmatmul.mubr.msk.f32.vlgmr.msra.gmra.mrb[0].mxu0 %vm266_vm0, %v261_v5  ;;  %v263_v9 = vld [vmem:[%s250_s13 + $0x18] sm:$0xff] }
  0x1d   : > { %721 = vmatmul.mubr.msk.f32.vlgmr.msra.gmra.mrb[0].mxu1 %vm266_vm0, %v365_v6  ;;  %713 = vmatprep.mubr.msk.f32.mxu0 %vm266_vm0, %v262_v7  ;;  %v367_v10 = vld [vmem:[%s256_s16 + $0x18] sm:$0xff]  ;;  %s788_s16 = scalar_lea.vmem %s995_s6, 512 }
  0x1e   : > { %723 = vmatprep.mubr.msk.f32.mxu1 %vm266_vm0, %v366_v8  ;;  %p789_p11 = scmp.ne.s32.totalorder %s995_s6, %s788_s16  ;;  %p796_p1 = scmp.lt.s32.totalorder %s794_s26, %s788_s16 }
  0x20   : > { %714 = vmatmul.mubr.msk.f32.gmra.mrb[2].mxu0 %vm266_vm0, %v263_v9  ;;  %p790_p12 = pnand %p789_p11, %p956_p5  ;;  %p797_p2 = por %p796_p1, %p795_p0 }
  0x21   : > { %724 = vmatmul.mubr.msk.f32.gmra.mrb[2].mxu1 %vm266_vm0, %v367_v10 }
  0x22   : > { %p791_p13 = pneg %p790_p12 }
  0x24   : > { %p798_p3 = pnand %p797_p2, %p791_p13 }
  0xef   : > { %v712_v11 = vpop.f32.mrb[0].mxu0 }
  0xf0   : > { %v722_v12 = vpop.f32.mrb[0].mxu1  ;;  %v466_v13 = vmul.f32 %v712_v11, %v712_v11  ;;  %v345_v15 = vpop.f32.mrb[1].mxu0 }
  0xf1   : > { %v470_v14 = vmul.f32 %v722_v12, %v722_v12  ;;  %v446_v16 = vpop.f32.mrb[1].mxu1  ;;  %v465_v17 = vmul.f32 %v345_v15, %v345_v15 }
  0xf2   : > { %v469_v18 = vmul.f32 %v446_v16, %v446_v16 }
  0xf3   : > { %v474_v19 = vadd.f32 %v470_v14, %v466_v13  ;;  %v715_v21 = vpop.f32.mrb[2].mxu0 }
  0xf4   : > { %v473_v20 = vadd.f32 %v469_v18, %v465_v17  ;;  %v725_v22 = vpop.f32.mrb[2].mxu1  ;;  %v468_v24 = vmul.f32 %v715_v21, %v715_v21  ;;  %v355_v26 = vpop.f32.mrb[3].mxu0 }
  0xf5   : > { %v478_v23 = vadd.f32 1e-24, %v474_v19  ;;  %v472_v25 = vmul.f32 %v725_v22, %v725_v22  ;;  %v456_v27 = vpop.f32.mrb[3].mxu1  ;;  %v467_v29 = vmul.f32 %v355_v26, %v355_v26 }
  0xf6   : > { %v477_v28 = vadd.f32 1e-24, %v473_v20  ;;  %v471_v30 = vmul.f32 %v456_v27, %v456_v27 }
  0xf7   : > { %780 = vrsqrt.f32 %v478_v23  ;;  %v476_v31 = vadd.f32 %v472_v25, %v468_v24 }
  0xf8   : > { %782 = vrsqrt.f32 %v477_v28  ;;  %v475_v32 = vadd.f32 %v471_v30, %v467_v29 }
  0xf9   : > { %v480_v33 = vadd.f32 1e-24, %v476_v31 }
  0xfa   : > { %v479_v34 = vadd.f32 1e-24, %v475_v32 }
  0xfb   : > { %784 = vrsqrt.f32 %v480_v33 }
  0xfc   : > { %786 = vrsqrt.f32 %v479_v34 }
 0x101   : > { %v781_v35 = vpop.eup %780 }
 0x102   : > { %v783_v37 = vpop.eup %782  ;;  %v486_v38 = vmul.f32 %v781_v35, %v474_v19 }
 0x103   : > { %v485_v39 = vmul.f32 %v783_v37, %v473_v20 }
 0x104   : > { %v497_v40 = vadd.f32 %v683_v36, %v486_v38 }
 0x105   : > { %v785_v41 = vpop.eup %784  ;;  %v496_v42 = vadd.f32 %v683_v36, %v485_v39 }
 0x106   : > { %v787_v43 = vpop.eup %786  ;;  %v501_v44 = vmax.f32 %v497_v40, 0.0  ;;  %v488_v45 = vmul.f32 %v785_v41, %v476_v31 }
 0x107   : > { %v500_v46 = vmax.f32 %v496_v42, 0.0  ;;  %v487_v47 = vmul.f32 %v787_v43, %v475_v32 }
 0x108   : > { %v505_v48 = vmul.f32 %v781_v35, %v501_v44  ;;  %v499_v49 = vadd.f32 %v683_v36, %v488_v45 }
 0x109   : > { %v504_v50 = vmul.f32 %v783_v37, %v500_v46  ;;  %v498_v51 = vadd.f32 %v683_v36, %v487_v47 }
 0x10a   : > { %v509_v52 = vmul.f32 %v712_v11, %v505_v48  ;;  %v517_v53 = vmul.f32 %v722_v12, %v505_v48  ;;  %v503_v54 = vmax.f32 %v499_v49, 0.0 }
 0x10b   : > { %v508_v55 = vmul.f32 %v504_v50, %v345_v15  ;;  %v516_v56 = vmul.f32 %v504_v50, %v446_v16  ;;  %v502_v57 = vmax.f32 %v498_v51, 0.0 }
 0x10c   : > { %513 = vst [vmem:[%s238_s30 + $0x8] sm:$0xff] %v509_v52  ;;  %521 = vst [vmem:[%s245_s8 + $0x8] sm:$0xff] %v517_v53  ;;  %v507_v58 = vmul.f32 %v785_v41, %v503_v54 }
 0x10d   : > { %512 = vst [vmem:[%s238_s30] sm:$0xff] %v508_v55  ;;  %520 = vst [vmem:[%s245_s8] sm:$0xff] %v516_v56  ;;  %v506_v59 = vmul.f32 %v787_v43, %v502_v57 }
 0x10e   : > { %v511_v60 = vmul.f32 %v715_v21, %v507_v58  ;;  %v519_v61 = vmul.f32 %v725_v22, %v507_v58 }
 0x10f   : > { %v510_v62 = vmul.f32 %v506_v59, %v355_v26  ;;  %v518_v63 = vmul.f32 %v506_v59, %v456_v27 }
 0x110   : > { %515 = vst [vmem:[%s238_s30 + $0x18] sm:$0xff] %v511_v60  ;;  %523 = vst [vmem:[%s245_s8 + $0x18] sm:$0xff] %v519_v61 }
 0x111   : > { %514 = vst [vmem:[%s238_s30 + $0x10] sm:$0xff] %v510_v62  ;;  %522 = vst [vmem:[%s245_s8 + $0x10] sm:$0xff] %v518_v63 }
 0x112   : > { %801 = shalt.err (!%p798_p3)
}
 0x113   : > { %s802_s30 = scalar_lea.hbm %s1000_s22, 512  ;;  %s806_s10 = scalar_lea.hbm %s1084_s4, 1024 }
 0x114   : > { %p803_p4 = scmp.ne.s32.totalorder %s1000_s22, %s802_s30  ;;  %p807_p9 = scmp.lt.u32.totalorder %s1000_s22, %s1084_s4 }
 0x115   : > { %p808_p10 = scmp.lt.u32.totalorder %s806_s10, %s802_s30  ;;  %p810_p12 = scmp.lt.u32.totalorder %s802_s30, %s1000_s22 }
 0x116   : > { %p804_p7 = pnand %p803_p4, %p956_p5 }
 0x117   : > { %p809_p11 = por %p808_p10, %p807_p9 }
 0x118   : > { %p805_p8 = pneg %p804_p7 }
 0x119   : > { %p811_p13 = por %p810_p12, %p809_p11 }
 0x11b   : > { %p812_p0 = pnand %p811_p13, %p805_p8 }
 0x11d   : > { %815 = shalt.err (!%p812_p0)
}
 0x11e   : > { %s885_s13 = smov 128   ;;  %s886_s16 = smov 8  }
 0x11f   : > { %734 = dma.vmem_to_hbm [thread:$0]  (%p956_p5), %s995_s6, 512, %s1000_s22, %s525_s15, %s885_s13, %s885_s13, %s886_s16  }
 0x120   : > { %s530_s17 = scalar_lea.sflag [#allocation5], %s991_s25  ;;  %s816_s23 = scalar_lea.vmem %s1002_s9, 512 }
 0x121   : > { %p817_p1 = scmp.ne.s32.totalorder %s1002_s9, %s816_s23  ;;  %s887_s26 = smov [#allocation4]  }
 0x122   : > { %s820_s30 = sshll.u32 %s887_s26, 4  ;;  %s821_s30 = int_to_ptr.vmem [resolvable:$false] %s820_s30 }
 0x123   : > { %p818_p2 = pnand %p817_p1, %p956_p5  ;;  %s822_s7 = scalar_lea.vmem %s821_s30, 1024 }
 0x124   : > { %p823_p4 = scmp.lt.s32.totalorder %s1002_s9, %s821_s30  ;;  %p824_p7 = scmp.lt.s32.totalorder %s822_s7, %s816_s23 }
 0x125   : > { %p819_p3 = pneg %p818_p2 }
 0x126   : > { %p825_p8 = por %p824_p7, %p823_p4 }
 0x128   : > { %p826_p9 = pnand %p825_p8, %p819_p3 }
 0x12a   : > { %829 = shalt.err (!%p826_p9)
}
 0x12b   : > { %s830_s6 = scalar_lea.hbm %s1007_s14, 512  ;;  %s834_s8 = scalar_lea.hbm %s1085_s5, 1024 }
 0x12c   : > { %p831_p10 = scmp.ne.s32.totalorder %s1007_s14, %s830_s6  ;;  %p835_p13 = scmp.lt.u32.totalorder %s1007_s14, %s1085_s5 }
 0x12d   : > { %p836_p0 = scmp.lt.u32.totalorder %s834_s8, %s830_s6  ;;  %p838_p2 = scmp.lt.u32.totalorder %s830_s6, %s1007_s14 }
 0x12e   : > { %p832_p11 = pnand %p831_p10, %p956_p5 }
 0x12f   : > { %p837_p1 = por %p836_p0, %p835_p13 }
 0x130   : > { %p833_p12 = pneg %p832_p11 }
 0x131   : > { %p839_p3 = por %p838_p2, %p837_p1 }
 0x133   : > { %p840_p4 = pnand %p839_p3, %p833_p12 }
 0x135   : > { %843 = shalt.err (!%p840_p4)
}
 0x136   : > { %735 = dma.vmem_to_hbm [thread:$0]  (%p956_p5), %s1002_s9, 512, %s1007_s14, %s530_s17, %s885_s13, %s885_s13, %s886_s16  }
 0x137 PF: > { %p745_p7 = scmp.ge.s32.totalorder %s882_s21, 2  ;;  %s574_s12 = sand.u32 1, %s870_s18  }
 0x138   : > { %s575_s23 = scalar_lea.sflag [#allocation3], %s574_s12 }
 0x139   : > { %p739_p8 = pnand %p745_p7, %p960_p6 }
 0x13b   : > { %861 = dma.done.wait (!%p739_p8), %s575_s23, 512  }
 0x13c   : > { %863 = vsyncadd (!%p739_p8), %s575_s23, 4294966784  ;;  %s584_s28 = scalar_lea.sflag [#allocation5], %s574_s12 }
 0x13d   : > { %865 = dma.done.wait (!%p739_p8), %s584_s28, 512  }
 0x13e   : > { %867 = vsyncadd (!%p739_p8), %s584_s28, 4294966784  ;;  %p19_p5 = scmp.ge.s32.totalorder %s943_s24, 4   ;;  %s1088_s18 = smov %s874_s19 }
 0x13f   : > { %s1089_s19 = smov %s878_s20  ;;  %s1090_s20 = smov %s954_s27 }
 0x140   : > { %s1091_s21 = smov %s943_s24  ;;  %21 = sbr.rel (!%p19_p5) target bundleno = 5 (0x5), region = 91 }
 0x147   :  { %589 = vsyncpa [#allocation3], 1 }
 0x148   :  { %591 = vsyncpa [#allocation3 + $0x1], 1 }
 0x149   :  { %592 = vsyncpa [#allocation5], 1 }
 0x14a   :  { %594 = vsyncpa [#allocation5 + $0x1], 1 }

</bundles_post_ra>
